<compile_context>
chip_gen: v7x
topology: tpu7x:2x2x1
jax: 0.10.0
libtpu: 0.0.40
codegen_flags: <defaults>
</compile_context>

<pallas_src>
import math

import jax
import jax.numpy as jnp
from jax.experimental import pallas as pl
from jax.experimental.pallas import tpu as pltpu


def _vmem_caps():
    """(sizing_budget, vmem_limit) in bytes, generation-aware when possible."""
    cap = None
    try:
        cap = getattr(pltpu.get_tpu_info(), "vmem_capacity_bytes", None)
    except Exception:
        cap = None
    if cap:
        return int(cap * 0.55), int(cap * 0.85)
    # Unknown generation: assume the small (v7x, 64 MiB) budget.
    return 36 * 1024 * 1024, 48 * 1024 * 1024


def _conv_plan(C, Cout, Ho, Wo, itemsize, budget):
    """Pick the Cout tile `tn` and the (possibly padded) Cout_p."""
    plane_bytes = 2 * 4 * (Ho + 1) * (Wo + 1) * C * itemsize      # double-buffered
    scratch_bytes = Ho * Wo * 9 * C * itemsize                    # local im2col

    def fits(tn):
        w_bytes = 2 * 9 * C * tn * itemsize
        o_bytes = 2 * tn * Ho * Wo * itemsize
        tmp_bytes = 2 * Ho * Wo * tn * 4                          # f32 acc + transpose
        return plane_bytes + scratch_bytes + w_bytes + o_bytes + tmp_bytes <= budget

    if fits(Cout):
        return Cout, Cout                                         # no Cout tiling
    # Prefer tn=256 (v7x-friendly), then other lane-dense divisors.
    for tn in (256, 512, 384, 128):
        if Cout % tn == 0 and fits(tn):
            return tn, Cout
    # No clean divisor: pad Cout up to a tile multiple (zero weight/bias cols).
    for tn in (256, 128):
        if fits(tn):
            return tn, ((Cout + tn - 1) // tn) * tn
    return 128, ((Cout + 127) // 128) * 128


def _conv_downsample_s2(x, weight_hwio, bias):
    """Conv2d(C, Cout, 3, stride=2, padding=1) on NCHW input, NCHW output."""
    N, C, H, W = x.shape
    Cout = weight_hwio.shape[-1]
    Ho = (H - 1) // 2 + 1
    Wo = (W - 1) // 2 + 1
    Hp, Wp = 2 * (Ho + 1), 2 * (Wo + 1)

    itemsize = jnp.dtype(x.dtype).itemsize
    budget, vmem_limit = _vmem_caps()
    tn, Cout_p = _conv_plan(C, Cout, Ho, Wo, itemsize, budget)
    n_j = Cout_p // tn

    # ---- fused prep: one transpose + pad + parity-plane stack ----------------
    # Padded pixel (2*ho+kh, 2*wo+kw) lives in parity plane (kh&1, kw&1) at
    # offset (ho + (kh>>1), wo + (kw>>1)); all 4 planes padded to the same
    # (Ho+1, Wo+1) extent (handles odd H/W) and stacked along the leading axis.
    x_nhwc = jnp.transpose(x, (0, 2, 3, 1))
    xp = jnp.pad(x_nhwc, ((0, 0), (1, Hp - 1 - H), (1, Wp - 1 - W), (0, 0)))
    planes = xp.reshape(N, Ho + 1, 2, Wo + 1, 2, C)
    planes = jnp.transpose(planes, (0, 2, 4, 1, 3, 5))        # (N,2,2,Ho+1,Wo+1,C)
    planes = planes.reshape(N * 4, Ho + 1, Wo + 1, C)         # plane p = 2*rp + cp

    w2d = weight_hwio.reshape(9 * C, Cout).astype(x.dtype)    # rows = (kh, kw, c)
    b2d = bias.reshape(1, Cout).astype(x.dtype)
    if Cout_p != Cout:
        w2d = jnp.pad(w2d, ((0, 0), (0, Cout_p - Cout)))
        b2d = jnp.pad(b2d, ((0, 0), (0, Cout_p - Cout)))

    def kernel(planes_ref, w_ref, b_ref, o_ref, lhs_ref):
        # planes_ref: (4, Ho+1, Wo+1, C); w_ref: (9C, tn); b_ref: (1, tn)
        # o_ref: (1, tn, Ho*Wo); lhs_ref: (Ho*Wo, 9C) VMEM scratch.
        j = pl.program_id(1)

        @pl.when(j == 0)           # build local im2col ONCE per image, reuse ∀ j
        def _():
            for kh in range(3):
                rp, dr = kh & 1, kh >> 1
                for kw in range(3):
                    cp, dc = kw & 1, kw >> 1
                    tap = planes_ref[2 * rp + cp, dr:dr + Ho, dc:dc + Wo, :]
                    t0 = (3 * kh + kw) * C
                    lhs_ref[:, t0:t0 + C] = tap.reshape(Ho * Wo, C)

        acc = jnp.dot(lhs_ref[...], w_ref[...],
                      preferred_element_type=jnp.float32)         # (Ho*Wo, tn)
        res = (acc + b_ref[...].astype(jnp.float32)).astype(o_ref.dtype)
        o_ref[0] = res.T           # cast BEFORE transpose -> half the XLU traffic

    flops = 2 * N * Ho * Wo * 9 * C * Cout_p
    bytes_accessed = int(
        planes.size * itemsize                 # parity planes, read once
        + N * w2d.size * itemsize              # weight re-fetched per image
        + b2d.size * itemsize
        + N * Cout_p * Ho * Wo * itemsize)     # output

    out_flat = pl.pallas_call(
        kernel,
        out_shape=jax.ShapeDtypeStruct((N, Cout_p, Ho * Wo), x.dtype),
        grid_spec=pltpu.PrefetchScalarGridSpec(
            num_scalar_prefetch=0,
            grid=(N, n_j),
            in_specs=[
                pl.BlockSpec((4, Ho + 1, Wo + 1, C), lambda n, j: (n, 0, 0, 0)),
                pl.BlockSpec((9 * C, tn), lambda n, j: (0, j)),
                pl.BlockSpec((1, tn), lambda n, j: (0, j)),
            ],
            out_specs=pl.BlockSpec((1, tn, Ho * Wo), lambda n, j: (n, j, 0)),
            scratch_shapes=[pltpu.VMEM((Ho * Wo, 9 * C), x.dtype)],
        ),
        compiler_params=pltpu.CompilerParams(
            # N is "parallel" (megacore); the Cout-tile axis is "arbitrary" so
            # the per-image lhs scratch built at j == 0 is valid on each core.
            dimension_semantics=("parallel", "arbitrary"),
            vmem_limit_bytes=vmem_limit,
        ),
        cost_estimate=pl.CostEstimate(flops=flops, transcendentals=0,
                                      bytes_accessed=bytes_accessed),
    )(planes, w2d, b2d)

    out = out_flat.reshape(N, Cout_p, Ho, Wo)   # free: contiguous relabel
    if Cout_p != Cout:
        out = out[:, :Cout]
    return out


def _pick_tc(C, H, W, itemsize, budget):
    """Channel tile for the avgpool block (multiple of 8, divides C)."""
    per_c = H * W * (2 * itemsize + 3 * 4)      # 2x double-buffered in + f32 temps
    cap = max(8, (budget * 3 // 4) // max(per_c, 1))
    if C <= cap:
        return C
    best = 0
    t = 8
    while t <= min(C, cap):
        if C % t == 0:
            best = t
        t += 8
    return best if best else C                  # fallback: no C tiling


def _avgpool2x2(x):
    """AvgPool2d(kernel=2, stride=2) on NCHW input, NCHW output."""
    N, C, H, W = x.shape
    Ho, Wo = H // 2, W // 2
    itemsize = jnp.dtype(x.dtype).itemsize
    budget, vmem_limit = _vmem_caps()
    tc = _pick_tc(C, H, W, itemsize, budget)
    n_c = C // tc

    # (W, Wo) column-pairing matrix, pre-scaled by the 1/4 pooling factor.
    # Rows w >= 2*Wo are all-zero, so an odd trailing column is dropped
    # automatically (matches AvgPool2d's floor semantics).
    pw = ((jnp.arange(W)[:, None] // 2 == jnp.arange(Wo)[None, :])
          .astype(jnp.float32) * 0.25)

    def kernel(x_ref, pw_ref, o_ref):
        # x_ref: (1, tc, H, W); pw_ref: (W, Wo); o_ref: (1, tc, Ho, Wo)
        xv = x_ref[0, :, :2 * Ho, :].astype(jnp.float32)     # f32 pair sums
        xv = xv.reshape(tc * Ho, 2, W)
        r = xv[:, 0, :] + xv[:, 1, :]                        # (tc*Ho, W) VPU add
        s = jnp.dot(r, pw_ref[...],
                    preferred_element_type=jnp.float32)      # one large-M GEMM
        o_ref[0] = s.reshape(tc, Ho, Wo).astype(o_ref.dtype)  # one-shot store

    flops = N * C * Ho * W + 2 * N * C * Ho * W * Wo
    bytes_accessed = int((x.size + N * C * Ho * Wo) * itemsize)

    return pl.pallas_call(
        kernel,
        out_shape=jax.ShapeDtypeStruct((N, C, Ho, Wo), x.dtype),
        grid_spec=pltpu.PrefetchScalarGridSpec(
            num_scalar_prefetch=0,
            grid=(N, n_c),
            in_specs=[
                pl.BlockSpec((1, tc, H, W), lambda n, c: (n, c, 0, 0)),
                pl.BlockSpec((W, Wo), lambda n, c: (0, 0)),
            ],
            out_specs=pl.BlockSpec((1, tc, Ho, Wo), lambda n, c: (n, c, 0, 0)),
        ),
        compiler_params=pltpu.CompilerParams(
            dimension_semantics=("parallel", "parallel"),
            vmem_limit_bytes=vmem_limit,
        ),
        cost_estimate=pl.CostEstimate(flops=flops, transcendentals=0,
                                      bytes_accessed=bytes_accessed),
    )(x, pw)


class Downsample:
    """JAX/Pallas port of the PyTorch Downsample module (dims=2 only)."""

    def __init__(self, channels, use_conv, dims=2, key=None, dtype=jnp.float32):
        assert dims == 2, "only dims=2 implemented"  # TODO(synk): dims=1/3
        self.channels = channels
        self.use_conv = use_conv
        if use_conv:
            k = 3
            fan_in = channels * k * k
            bound = 1.0 / math.sqrt(fan_in)   # PyTorch Conv2d default init range
            kw_key, kb_key = jax.random.split(key)
            # weight layout: (KH, KW, Cin, Cout)
            self.weight = jax.random.uniform(
                kw_key, (k, k, channels, channels), dtype, -bound, bound)
            self.bias = jax.random.uniform(kb_key, (channels,), dtype, -bound, bound)

    def __call__(self, x_nchw):
        assert x_nchw.shape[1] == self.channels
        if self.use_conv:
            return _conv_downsample_s2(x_nchw, self.weight, self.bias)
        return _avgpool2x2(x_nchw)


if __name__ == "__main__":
    key = jax.random.PRNGKey(0)
    kx, kp = jax.random.split(key)
    x = jax.random.normal(kx, (2, 4, 16, 16), jnp.float32)

    # --- use_conv=True path: Conv2d(C, C, 3, stride=2, padding=1) ---
    down = Downsample(channels=4, use_conv=True, dims=2, key=kp)
    y = down(x)
    jax.block_until_ready(y)
    assert y.shape == (2, 4, 8, 8)

    # reference (plain JAX conv) for correctness
    w_oihw = jnp.transpose(down.weight, (3, 2, 0, 1))
    y_ref = jax.lax.conv_general_dilated(
        x, w_oihw, window_strides=(2, 2), padding=((1, 1), (1, 1)),
        dimension_numbers=("NCHW", "OIHW", "NCHW"),
    ) + down.bias[None, :, None, None]
    assert jnp.allclose(y, y_ref, atol=1e-4, rtol=1e-4)

    # --- use_conv=False path: AvgPool2d(2) ---
    down_pool = Downsample(channels=4, use_conv=False, dims=2, key=kp)
    y2 = down_pool(x)
    jax.block_until_ready(y2)
    assert y2.shape == (2, 4, 8, 8)
    y2_ref = jnp.mean(x.reshape(2, 4, 8, 2, 8, 2), axis=(3, 5))
    assert jnp.allclose(y2, y2_ref, atol=1e-4, rtol=1e-4)

    print("KERNEL_OK")
</pallas_src>

<mosaic_0001>
module attributes {stable_mosaic.version = 11 : i64} {
  func.func @kernel(%arg0: i32, %arg1: i32, %arg2: memref<4x9x9x4xf32, #tpu.memory_space<vmem>>, %arg3: memref<36x4xf32, #tpu.memory_space<vmem>>, %arg4: memref<1x4xf32, #tpu.memory_space<vmem>>, %arg5: memref<1x4x64xf32, #tpu.memory_space<vmem>>, %arg6: memref<64x36xf32, #tpu.memory_space<vmem>>) attributes {dimension_semantics = [#tpu.dimension_semantics<parallel>, #tpu.dimension_semantics<arbitrary>], iteration_bounds = array<i64: 2, 1>, scalar_prefetch = 0 : i64, scratch_operands = 1 : i64, tpu.core_type = #tpu.core_type<tc>, window_params = [{transform_indices = @transform_0, window_bounds = array<i64: 4, 9, 9, 4>}, {transform_indices = @transform_1, window_bounds = array<i64: 36, 4>}, {transform_indices = @transform_2, window_bounds = array<i64: 1, 4>}, {transform_indices = @transform_3, window_bounds = array<i64: 1, 4, 64>}]} {
    %c0_i32 = arith.constant 0 : i32
    %0 = arith.cmpi eq, %arg1, %c0_i32 : i32
    %1 = arith.extui %0 : i1 to i32
    %c0_i32_0 = arith.constant 0 : i32
    %2 = arith.cmpi ne, %1, %c0_i32_0 : i32
    scf.if %2 {
      %c0_9 = arith.constant 0 : index
      %c0_10 = arith.constant 0 : index
      %c0_11 = arith.constant 0 : index
      %c0_12 = arith.constant 0 : index
      %13 = vector.load %arg2[%c0_9, %c0_10, %c0_11, %c0_12] : memref<4x9x9x4xf32, #tpu.memory_space<vmem>>, vector<1x8x8x4xf32>
      %14 = vector.shape_cast %13 : vector<1x8x8x4xf32> to vector<8x8x4xf32>
      %15 = vector.shape_cast %14 : vector<8x8x4xf32> to vector<64x4xf32>
      %c0_13 = arith.constant 0 : index
      %c0_14 = arith.constant 0 : index
      %16 = vector.load %arg6[%c0_13, %c0_14] : memref<64x36xf32, #tpu.memory_space<vmem>>, vector<64x4xf32>
      tpu.vector_store %arg6[%c0_13, %c0_14], %15 {strides = array<i32>} : memref<64x36xf32, #tpu.memory_space<vmem>>, vector<64x4xf32>,
      %c1 = arith.constant 1 : index
      %c0_15 = arith.constant 0 : index
      %c0_16 = arith.constant 0 : index
      %c0_17 = arith.constant 0 : index
      %17 = vector.load %arg2[%c1, %c0_15, %c0_16, %c0_17] : memref<4x9x9x4xf32, #tpu.memory_space<vmem>>, vector<1x8x8x4xf32>
      %18 = vector.shape_cast %17 : vector<1x8x8x4xf32> to vector<8x8x4xf32>
      %19 = vector.shape_cast %18 : vector<8x8x4xf32> to vector<64x4xf32>
      %c0_18 = arith.constant 0 : index
      %c4 = arith.constant 4 : index
      %20 = vector.load %arg6[%c0_18, %c4] : memref<64x36xf32, #tpu.memory_space<vmem>>, vector<64x4xf32>
      tpu.vector_store %arg6[%c0_18, %c4], %19 {strides = array<i32>} : memref<64x36xf32, #tpu.memory_space<vmem>>, vector<64x4xf32>,
      %c0_19 = arith.constant 0 : index
      %c0_20 = arith.constant 0 : index
      %c1_21 = arith.constant 1 : index
      %c0_22 = arith.constant 0 : index
      %21 = vector.load %arg2[%c0_19, %c0_20, %c1_21, %c0_22] : memref<4x9x9x4xf32, #tpu.memory_space<vmem>>, vector<1x8x8x4xf32>
      %22 = vector.shape_cast %21 : vector<1x8x8x4xf32> to vector<8x8x4xf32>
      %23 = vector.shape_cast %22 : vector<8x8x4xf32> to vector<64x4xf32>
      %c0_23 = arith.constant 0 : index
      %c8 = arith.constant 8 : index
      %24 = vector.load %arg6[%c0_23, %c8] : memref<64x36xf32, #tpu.memory_space<vmem>>, vector<64x4xf32>
      tpu.vector_store %arg6[%c0_23, %c8], %23 {strides = array<i32>} : memref<64x36xf32, #tpu.memory_space<vmem>>, vector<64x4xf32>,
      %c2 = arith.constant 2 : index
      %c0_24 = arith.constant 0 : index
      %c0_25 = arith.constant 0 : index
      %c0_26 = arith.constant 0 : index
      %25 = vector.load %arg2[%c2, %c0_24, %c0_25, %c0_26] : memref<4x9x9x4xf32, #tpu.memory_space<vmem>>, vector<1x8x8x4xf32>
      %26 = vector.shape_cast %25 : vector<1x8x8x4xf32> to vector<8x8x4xf32>
      %27 = vector.shape_cast %26 : vector<8x8x4xf32> to vector<64x4xf32>
      %c0_27 = arith.constant 0 : index
      %c12 = arith.constant 12 : index
      %28 = vector.load %arg6[%c0_27, %c12] : memref<64x36xf32, #tpu.memory_space<vmem>>, vector<64x4xf32>
      tpu.vector_store %arg6[%c0_27, %c12], %27 {strides = array<i32>} : memref<64x36xf32, #tpu.memory_space<vmem>>, vector<64x4xf32>,
      %c3 = arith.constant 3 : index
      %c0_28 = arith.constant 0 : index
      %c0_29 = arith.constant 0 : index
      %c0_30 = arith.constant 0 : index
      %29 = vector.load %arg2[%c3, %c0_28, %c0_29, %c0_30] : memref<4x9x9x4xf32, #tpu.memory_space<vmem>>, vector<1x8x8x4xf32>
      %30 = vector.shape_cast %29 : vector<1x8x8x4xf32> to vector<8x8x4xf32>
      %31 = vector.shape_cast %30 : vector<8x8x4xf32> to vector<64x4xf32>
      %c0_31 = arith.constant 0 : index
      %c16 = arith.constant 16 : index
      %32 = vector.load %arg6[%c0_31, %c16] : memref<64x36xf32, #tpu.memory_space<vmem>>, vector<64x4xf32>
      tpu.vector_store %arg6[%c0_31, %c16], %31 {strides = array<i32>} : memref<64x36xf32, #tpu.memory_space<vmem>>, vector<64x4xf32>,
      %c2_32 = arith.constant 2 : index
      %c0_33 = arith.constant 0 : index
      %c1_34 = arith.constant 1 : index
      %c0_35 = arith.constant 0 : index
      %33 = vector.load %arg2[%c2_32, %c0_33, %c1_34, %c0_35] : memref<4x9x9x4xf32, #tpu.memory_space<vmem>>, vector<1x8x8x4xf32>
      %34 = vector.shape_cast %33 : vector<1x8x8x4xf32> to vector<8x8x4xf32>
      %35 = vector.shape_cast %34 : vector<8x8x4xf32> to vector<64x4xf32>
      %c0_36 = arith.constant 0 : index
      %c20 = arith.constant 20 : index
      %36 = vector.load %arg6[%c0_36, %c20] : memref<64x36xf32, #tpu.memory_space<vmem>>, vector<64x4xf32>
      tpu.vector_store %arg6[%c0_36, %c20], %35 {strides = array<i32>} : memref<64x36xf32, #tpu.memory_space<vmem>>, vector<64x4xf32>,
      %c0_37 = arith.constant 0 : index
      %c1_38 = arith.constant 1 : index
      %c0_39 = arith.constant 0 : index
      %c0_40 = arith.constant 0 : index
      %37 = vector.load %arg2[%c0_37, %c1_38, %c0_39, %c0_40] : memref<4x9x9x4xf32, #tpu.memory_space<vmem>>, vector<1x8x8x4xf32>
      %38 = vector.shape_cast %37 : vector<1x8x8x4xf32> to vector<8x8x4xf32>
      %39 = vector.shape_cast %38 : vector<8x8x4xf32> to vector<64x4xf32>
      %c0_41 = arith.constant 0 : index
      %c24 = arith.constant 24 : index
      %40 = vector.load %arg6[%c0_41, %c24] : memref<64x36xf32, #tpu.memory_space<vmem>>, vector<64x4xf32>
      tpu.vector_store %arg6[%c0_41, %c24], %39 {strides = array<i32>} : memref<64x36xf32, #tpu.memory_space<vmem>>, vector<64x4xf32>,
      %c1_42 = arith.constant 1 : index
      %c1_43 = arith.constant 1 : index
      %c0_44 = arith.constant 0 : index
      %c0_45 = arith.constant 0 : index
      %41 = vector.load %arg2[%c1_42, %c1_43, %c0_44, %c0_45] : memref<4x9x9x4xf32, #tpu.memory_space<vmem>>, vector<1x8x8x4xf32>
      %42 = vector.shape_cast %41 : vector<1x8x8x4xf32> to vector<8x8x4xf32>
      %43 = vector.shape_cast %42 : vector<8x8x4xf32> to vector<64x4xf32>
      %c0_46 = arith.constant 0 : index
      %c28 = arith.constant 28 : index
      %44 = vector.load %arg6[%c0_46, %c28] : memref<64x36xf32, #tpu.memory_space<vmem>>, vector<64x4xf32>
      tpu.vector_store %arg6[%c0_46, %c28], %43 {strides = array<i32>} : memref<64x36xf32, #tpu.memory_space<vmem>>, vector<64x4xf32>,
      %c0_47 = arith.constant 0 : index
      %c1_48 = arith.constant 1 : index
      %c1_49 = arith.constant 1 : index
      %c0_50 = arith.constant 0 : index
      %45 = vector.load %arg2[%c0_47, %c1_48, %c1_49, %c0_50] : memref<4x9x9x4xf32, #tpu.memory_space<vmem>>, vector<1x8x8x4xf32>
      %46 = vector.shape_cast %45 : vector<1x8x8x4xf32> to vector<8x8x4xf32>
      %47 = vector.shape_cast %46 : vector<8x8x4xf32> to vector<64x4xf32>
      %c0_51 = arith.constant 0 : index
      %c32 = arith.constant 32 : index
      %48 = vector.load %arg6[%c0_51, %c32] : memref<64x36xf32, #tpu.memory_space<vmem>>, vector<64x4xf32>
      tpu.vector_store %arg6[%c0_51, %c32], %47 {strides = array<i32>} : memref<64x36xf32, #tpu.memory_space<vmem>>, vector<64x4xf32>,
    } else {
    }
    %c0 = arith.constant 0 : index
    %c0_1 = arith.constant 0 : index
    %3 = vector.load %arg6[%c0, %c0_1] : memref<64x36xf32, #tpu.memory_space<vmem>>, vector<64x36xf32>
    %c0_2 = arith.constant 0 : index
    %c0_3 = arith.constant 0 : index
    %4 = vector.load %arg3[%c0_2, %c0_3] : memref<36x4xf32, #tpu.memory_space<vmem>>, vector<36x4xf32>
    %cst = arith.constant dense<0.000000e+00> : vector<64x4xf32>
    %5 = tpu.matmul %3, %4, %cst {dimension_numbers = #tpu.dot_dimension_numbers<[1], [0], [0], [1], [0, 0, 1, 1], [], []>} : vector<64x36xf32>, vector<36x4xf32>, vector<64x4xf32> -> vector<64x4xf32>
    %c0_4 = arith.constant 0 : index
    %c0_5 = arith.constant 0 : index
    %6 = vector.load %arg4[%c0_4, %c0_5] : memref<1x4xf32, #tpu.memory_space<vmem>>, vector<1x4xf32>
    %7 = vector.broadcast %6 : vector<1x4xf32> to vector<64x4xf32>
    %8 = arith.addf %5, %7 : vector<64x4xf32>
    %9 = tpu.transpose %8, [1, 0] : vector<64x4xf32> -> vector<4x64xf32>
    %c0_6 = arith.constant 0 : index
    %c0_7 = arith.constant 0 : index
    %c0_8 = arith.constant 0 : index
    %10 = vector.load %arg5[%c0_6, %c0_7, %c0_8] : memref<1x4x64xf32, #tpu.memory_space<vmem>>, vector<1x4x64xf32>
    %11 = vector.shape_cast %10 : vector<1x4x64xf32> to vector<4x64xf32>
    %12 = vector.shape_cast %9 : vector<4x64xf32> to vector<1x4x64xf32>
    tpu.vector_store %arg5[%c0_6, %c0_7, %c0_8], %12 {strides = array<i32>} : memref<1x4x64xf32, #tpu.memory_space<vmem>>, vector<1x4x64xf32>,
    return
  }
  func.func @transform_0(%arg0: i32, %arg1: i32) -> (i32, i32, i32, i32) {
    %c0_i32 = arith.constant 0 : i32
    %c0_i32_0 = arith.constant 0 : i32
    %c0_i32_1 = arith.constant 0 : i32
    %c0_i32_2 = arith.constant 0 : i32
    return %arg0, %c0_i32, %c0_i32_0, %c0_i32_1 : i32, i32, i32, i32
  }
  func.func @transform_1(%arg0: i32, %arg1: i32) -> (i32, i32) {
    %c0_i32 = arith.constant 0 : i32
    %c0_i32_0 = arith.constant 0 : i32
    return %c0_i32, %arg1 : i32, i32
  }
  func.func @transform_2(%arg0: i32, %arg1: i32) -> (i32, i32) {
    %c0_i32 = arith.constant 0 : i32
    %c0_i32_0 = arith.constant 0 : i32
    return %c0_i32, %arg1 : i32, i32
  }
  func.func @transform_3(%arg0: i32, %arg1: i32) -> (i32, i32, i32) {
    %c0_i32 = arith.constant 0 : i32
    %c0_i32_0 = arith.constant 0 : i32
    return %arg0, %arg1, %c0_i32 : i32, i32, i32
  }
}

</mosaic_0001>

<bundles_post_ra>
// kernel: tpu_custom_call.1
= control target key start
LH: loop header
LB: loop body
LE: loop exit
PB: predicated region body
PF: predicated region fallthrough
CT: control target
= control target key end

     0   :  { %8 = vsyncpa [#allocation4], 0  ;;  %s1588_s0 = inlined_call_operand.vmem [shape: f32[8,9,9,4], index: 0, kind: input, shape index: {}]   ;;  %s1589_s1 = inlined_call_operand.vmem [shape: f32[36,4], index: 1, kind: input, shape index: {}]   ;;  %s1590_s2 = inlined_call_operand.vmem [shape: f32[1,4], index: 2, kind: input, shape index: {}]   ;;  %s1591_s3 = inlined_call_operand.hbm [shape: f32[2,4,64], index: 3, kind: output, shape index: {}]  }
   0x1   :  { %10 = vsyncpa [#allocation4 + $0x1], 0  ;;  %s1238_s12 = smov 0   ;;  %s1240_s13 = smov 0  }
   0x2   :  { %s1242_s14 = smov 0   ;;  %s1244_s15 = smov 0  }
   0x3   :  { %s1246_s16 = smov 0   ;;  %s1248_s17 = smov 0  }
   0x4 LB: > { %s935_s18 = sadd.s32 4294967295, %s1207_s17   ;;  %s936_s19 = sadd.s32 4294967294, %s1207_s17   ;;  %s1207_s17 = sphi %s1248_s17, %s16_s17   ;;  %s1203_s16 = sphi %s1246_s16, %s1598_s16   ;;  %s1199_s15 = sphi %s1244_s15, %s1597_s15   ;;  %s1195_s14 = sphi %s1242_s14, %s1596_s14   ;;  %s1191_s13 = sphi %s1240_s13, %s1595_s13   ;;  %s1187_s12 = sphi %s1238_s12, %s1594_s12  }
   0x5   : > { %s28_s20 = sadd.s32 1, %s1203_s16  ;;  %s115_s21 = sadd.s32 1, %s1195_s14 }
   0x6   : > { %p30_p0 = scmp.ge.s32.totalorder %s28_s20, 2  ;;  %p125_p1 = scmp.ne.s32.totalorder %s1195_s14, %s1191_s13 }
   0x7   : > { %p126_p2 = scmp.eq.s32.totalorder %s935_s18, 1  ;;  %p131_p3 = scmp.ne.s32.totalorder %s1191_s13, %s1187_s12 }
   0x8   : > { %s1600_s20 = smov (%p30_p0, %s28_s20), 0  ;;  %p132_p5 = scmp.eq.s32.totalorder %s936_s19, 1 }
   0x9   : > { %p1278_p4 = por %p126_p2, %p125_p1  ;;  %s110_s23 = ssub.s32 %s1203_s16, %s1600_s20 }
   0xa   : > { %p941_p6 = scmp.ge.s32.totalorder %s1207_s17, 1  ;;  %p113_p7 = scmp.eq.s32.totalorder %s110_s23, 0 }
   0xb   : > { %p1285_p8 = por %p132_p5, %p131_p3  ;;  %p173_p9 = scmp.lt.s32.totalorder %s1207_s17, 3 }
   0xc   : > { %s1291_s25 = scalar_select %p113_p7, %s1195_s14, %s115_s21  }
   0xd   : > { %p174_p10 = pnand %p941_p6, %p173_p9 }
   0xe   : > { %s943_s26 = sshll.u32 (!%p174_p10), %s1199_s15, 2  ;;  %s1209_s4 = smov (!%p174_p10), 8   ;;  %vm231_vm0 = vcmask (!%p174_p10), 31744   ;;  %v645_v23 = vld [vmem:[%s1589_s1] sm:$0xff] (!%p174_p10)  ;;  %v646_v24 = vld [vmem:[%s1589_s1 + $0x8] sm:$0xff] (!%p174_p10)  ;;  %v647_v28 = vld [vmem:[%s1589_s1 + $0x10] sm:$0xff] (!%p174_p10) }
   0xf   : > { %177 = sbr.rel (%p174_p10) target bundleno = 609 (0x261), region = 32  ;;  %p206_p11 = scmp.lt.s32.totalorder (!%p174_p10), %s943_s26, 7  ;;  %v1050_v25 = vpack.c.bf16 (!%p174_p10), %v646_v24, %v645_v23  ;;  %v648_v29 = vld [vmem:[%s1589_s1 + $0x18] sm:$0xff] (!%p174_p10)  ;;  %v649_v31 = vld [vmem:[%s1589_s1 + $0x20] sm:$0xf] (!%p174_p10)  ;;  %vm682_vm1 = vcmask (!%p174_p10), 1043456  }
  0x10   : > { %s1210_s5 = smov (!%p174_p10), 4   ;;  %s1211_s6 = smov (!%p174_p10), 12   ;;  %v1054_v30 = vpack.c.bf16 (!%p174_p10), %v648_v29, %v647_v28  ;;  %vm281_vm2 = vcmask (!%p174_p10), 64544   ;;  %vm330_vm3 = vcmask (!%p174_p10), 97344   ;;  %vm380_vm4 = vcmask (!%p174_p10), 130144  }
  0x11   : > { %s1212_s7 = smov (!%p174_p10), 16   ;;  %s1213_s8 = smov (!%p174_p10), 20   ;;  %1051 = vmatprep.subr.bf16.mxu0 (!%p174_p10), %v1050_v25  ;;  %1058 = vmatprep.subr.bf16.mxu1 (!%p174_p10), %v1050_v25  ;;  %vm430_vm5 = vcmask (!%p174_p10), 162944   ;;  %vm479_vm6 = vcmask (!%p174_p10), 195744   ;;  %vm529_vm7 = vcmask (!%p174_p10), 228544   ;;  %vm579_vm8 = vcmask (!%p174_p10), 261344  }
  0x12   : > { %s1214_s9 = smov (!%p174_p10), 24   ;;  %s1215_s21 = smov (!%p174_p10), 28   ;;  %1053 = vmatpush3.bf16.msra.mxu0 (!%p174_p10), %v1050_v25  ;;  %1061 = vmatpush3.bf16.msra.mxu1 (!%p174_p10), %v1050_v25  ;;  %vm628_vm9 = vcmask (!%p174_p10), 294144   ;;  %vm657_vm10 = vcmask (!%p174_p10), 293888   ;;  %vm823_vm11 = vcmask (!%p174_p10), 519168  }
  0x13   : > { %1055 = vmatprep.subr.bf16.mxu0 (!%p174_p10), %v1054_v30  ;;  %1059 = vmatprep.subr.bf16.mxu1 (!%p174_p10), %v1054_v30  ;;  %s1216_s11 = smov (!%p174_p10), 32  }
  0x16   : > { %s1602_s26 = smov (!%p206_p11, %s943_s26), 7  ;;  %1057 = vmatpush3.bf16.msra.mxu0 %v1054_v30  ;;  %1062 = vmatpush3.bf16.msra.mxu1 %v1054_v30 }
  0x17   : > { %s1064_s27 = smul.u32 144, %s1602_s26  ;;  %1036 = vmatprep.subr.msk.mxu0 %vm682_vm1, %v649_v31  ;;  %1060 = vmatprep.subr.msk.mxu1 %vm682_vm1, %v649_v31 }
  0x19   : > { %s1297_s30 = scalar_lea.vmem %s1588_s0, %s1064_s27 }
  0x1a   : > { %v290_v0 = vld [vmem:[%s1297_s30 + $0x1] sm:$0xff]  ;;  %v945_v1 = vld [vmem:[%s1297_s30 + $0x90] sm:$0xff]  ;;  %1037 = vmatpush3.msk.msra.mxu0 %vm682_vm1, %v649_v31  ;;  %1063 = vmatpush3.msk.msra.mxu1 %vm682_vm1, %v649_v31 }
  0x1b   : > { %306 = vrot.lane.b32.xlu1 %v290_v0, %s1209_s4  ;;  %257 = vrot.lane.b32.xlu0 %v945_v1, %s1210_s5  ;;  %v1304_v2 = vld [vmem:[%s1297_s30 + $0x11] sm:$0xff]  ;;  %v946_v3 = vld [vmem:[%s1297_s30 + $0xa0] sm:$0xff] }
  0x1c   : > { %v977_v4 = vld [vmem:[%s1297_s30 + $0x10] sm:$0xff]  ;;  %v953_v6 = vld [vmem:[%s1297_s30 + $0x120] sm:$0xff] }
  0x1d   : > { %233 = vst.msk [vmem:[#allocation2 + $0x8] sm:$0xff] %vm231_vm0, %v977_v4  ;;  %v954_v5 = vld [vmem:[%s1297_s30 + $0x130] sm:$0xff]  ;;  %v978_v7 = vld [vmem:[%s1297_s30 + $0x20] sm:$0xff] }
  0x1e   : > { %234 = vst.msk [vmem:[#allocation2 + $0x10] sm:$0xff] %vm231_vm0, %v978_v7  ;;  %v1317_v8 = vld [vmem:[%s1297_s30 + $0x30] sm:$0xff]  ;;  %v1326_v11 = vld [vmem:[%s1297_s30 + $0x40] sm:$0xff] }
  0x1f   : > { %308 = vrot.lane.b32.xlu1 %v1304_v2, %s1209_s4  ;;  %259 = vrot.lane.b32.xlu0 %v946_v3, %s1210_s5  ;;  %235 = vst.msk [vmem:[#allocation2 + $0x18] sm:$0xff] %vm231_vm0, %v1317_v8  ;;  %v947_v9 = vld [vmem:[%s1297_s30 + $0xb0] sm:$0xff]  ;;  %236 = vst.msk [vmem:[#allocation2 + $0x20] sm:$0xff] %vm231_vm0, %v1326_v11  ;;  %v969_v13 = vld [vmem:[%s1297_s30 + $0x121] sm:$0xff] }
  0x20   : > { %v961_v10 = vld [vmem:[%s1297_s30 + $0x1b0] sm:$0xff]  ;;  %v962_v14 = vld [vmem:[%s1297_s30 + $0x1c0] sm:$0xff] }
  0x21   : > { %v1333_v12 = vld [vmem:[%s1297_s30 + $0x50] sm:$0xff]  ;;  %v1338_v15 = vld [vmem:[%s1297_s30 + $0x60] sm:$0xff] }
  0x22   : > { %237 = vst.msk [vmem:[#allocation2 + $0x28] sm:$0xff] %vm231_vm0, %v1333_v12  ;;  %238 = vst.msk [vmem:[#allocation2 + $0x30] sm:$0xff] %vm231_vm0, %v1338_v15  ;;  %v223_v16 = vld [vmem:[%s1297_s30] sm:$0xff]  ;;  %v1349_v17 = vld [vmem:[%s1297_s30 + $0x70] sm:$0xff] }
  0x23   : > { %358 = vrot.lane.b32.xlu1 %v954_v5, %s1211_s6  ;;  %356 = vrot.lane.b32.xlu0 %v953_v6, %s1211_s6  ;;  %232 = vst.msk [vmem:[#allocation2] sm:$0xff] %vm231_vm0, %v223_v16  ;;  %v292_v18 = vld [vmem:[%s1297_s30 + $0x21] sm:$0xff]  ;;  %239 = vst.msk [vmem:[#allocation2 + $0x38] sm:$0xff] %vm231_vm0, %v1349_v17  ;;  %v970_v20 = vld [vmem:[%s1297_s30 + $0x131] sm:$0xff] }
  0x24   : > { %v948_v19 = vld [vmem:[%s1297_s30 + $0xc0] sm:$0xff]  ;;  %v293_v22 = vld [vmem:[%s1297_s30 + $0x31] sm:$0xff] }
  0x25   : > { %v955_v21 = vld [vmem:[%s1297_s30 + $0x140] sm:$0xff]  ;;  %v963_v26 = vld [vmem:[%s1297_s30 + $0x1d0] sm:$0xff] }
  0x26   : > { %v956_v27 = vld [vmem:[%s1297_s30 + $0x150] sm:$0xff]  ;;  %v964_v32 = vld [vmem:[%s1297_s30 + $0x1e0] sm:$0xff] }
  0x27   : > { %261 = vrot.lane.b32.xlu1 %v947_v9, %s1210_s5  ;;  %406 = vrot.lane.b32.xlu0 %v961_v10, %s1212_s7  ;;  %v949_v33 = vld [vmem:[%s1297_s30 + $0xd0] sm:$0xff]  ;;  %v971_v34 = vld [vmem:[%s1297_s30 + $0x141] sm:$0xff] }
  0x28   : > { %v294_v35 = vld [vmem:[%s1297_s30 + $0x41] sm:$0xff]  ;;  %v972_v37 = vld [vmem:[%s1297_s30 + $0x151] sm:$0xff] }
  0x29   : > { %v950_v36 = vld [vmem:[%s1297_s30 + $0xe0] sm:$0xff]  ;;  %v295_v39 = vld [vmem:[%s1297_s30 + $0x51] sm:$0xff] }
  0x2a   : > { %v957_v38 = vld [vmem:[%s1297_s30 + $0x160] sm:$0xff]  ;;  %v965_v40 = vld [vmem:[%s1297_s30 + $0x1f0] sm:$0xff] }
  0x2b   : > { %455 = vrot.lane.b32.xlu1 %v969_v13, %s1213_s8  ;;  %408 = vrot.lane.b32.xlu0 %v962_v14, %s1212_s7  ;;  %v958_v41 = vld [vmem:[%s1297_s30 + $0x170] sm:$0xff]  ;;  %v966_v42 = vld [vmem:[%s1297_s30 + $0x200] sm:$0xff] }
  0x2c   : > { %v951_v43 = vld [vmem:[%s1297_s30 + $0xf0] sm:$0xff]  ;;  %v973_v44 = vld [vmem:[%s1297_s30 + $0x161] sm:$0xff] }
  0x2d   : > { %v952_v45 = vld [vmem:[%s1297_s30 + $0x100] sm:$0xff]  ;;  %v974_v47 = vld [vmem:[%s1297_s30 + $0x171] sm:$0xff] }
  0x2e   : > { %v296_v46 = vld [vmem:[%s1297_s30 + $0x61] sm:$0xff]  ;;  %v297_v48 = vld [vmem:[%s1297_s30 + $0x71] sm:$0xff] }
  0x2f   : > { %310 = vrot.lane.b32.xlu1 %v292_v18, %s1209_s4  ;;  %263 = vrot.lane.b32.xlu0 %v948_v19, %s1210_s5  ;;  %v959_v49 = vld [vmem:[%s1297_s30 + $0x180] sm:$0xff]  ;;  %v960_v50 = vld [vmem:[%s1297_s30 + $0x190] sm:$0xff] }
  0x30   : > { %v967_v51 = vld [vmem:[%s1297_s30 + $0x210] sm:$0xff]  ;;  %v968_v52 = vld [vmem:[%s1297_s30 + $0x220] sm:$0xff] }
  0x31   : > { %v975_v53 = vld [vmem:[%s1297_s30 + $0x181] sm:$0xff]  ;;  %v976_v54 = vld [vmem:[%s1297_s30 + $0x191] sm:$0xff] }
  0x32   : > { %v984_v55 = vld [vmem:[%s1297_s30 + $0x80] sm:$0xff]  ;;  %v992_v58 = vld [vmem:[%s1297_s30 + $0x110] sm:$0xff] }
  0x33   : > { %505 = vrot.lane.b32.xlu1 %v977_v4, %s1214_s9  ;;  %457 = vrot.lane.b32.xlu0 %v970_v20, %s1213_s8  ;;  %v1000_v61 = vld [vmem:[%s1297_s30 + $0x81] sm:$0xff] }
  0x37   : > { %360 = vrot.lane.b32.xlu1 %v955_v21, %s1211_s6  ;;  %312 = vrot.lane.b32.xlu0 %v293_v22, %s1209_s4 }
  0x3b   : > { %555 = vrot.lane.b32.xlu1 %v946_v3, %s1215_s21  ;;  %507 = vrot.lane.b32.xlu0 %v978_v7, %s1214_s9 }
  0x3f   : > { %410 = vrot.lane.b32.xlu1 %v963_v26, %s1212_s7  ;;  %362 = vrot.lane.b32.xlu0 %v956_v27, %s1211_s6 }
  0x43   : > { %604 = vrot.lane.b32.xlu1 %v1304_v2, %s1216_s11  ;;  %557 = vrot.lane.b32.xlu0 %v947_v9, %s1215_s21 }
  0x47   : > { %412 = vrot.lane.b32.xlu1 %v964_v32, %s1212_s7  ;;  %265 = vrot.lane.b32.xlu0 %v949_v33, %s1210_s5 }
  0x4b   : > { %606 = vrot.lane.b32.xlu1 %v292_v18, %s1216_s11  ;;  %459 = vrot.lane.b32.xlu0 %v971_v34, %s1213_s8 }
  0x4f   : > { %314 = vrot.lane.b32.xlu1 %v294_v35, %s1209_s4  ;;  %267 = vrot.lane.b32.xlu0 %v950_v36, %s1210_s5 }
  0x53   : > { %509 = vrot.lane.b32.xlu1 %v1317_v8, %s1214_s9  ;;  %461 = vrot.lane.b32.xlu0 %v972_v37, %s1213_s8 }
  0x57   : > { %364 = vrot.lane.b32.xlu1 %v957_v38, %s1211_s6  ;;  %316 = vrot.lane.b32.xlu0 %v295_v39, %s1209_s4 }
  0x5b   : > { %559 = vrot.lane.b32.xlu1 %v948_v19, %s1215_s21  ;;  %511 = vrot.lane.b32.xlu0 %v1326_v11, %s1214_s9 }
  0x5f   : > { %414 = vrot.lane.b32.xlu1 %v965_v40, %s1212_s7  ;;  %366 = vrot.lane.b32.xlu0 %v958_v41, %s1211_s6 }
  0x63   : > { %608 = vrot.lane.b32.xlu1 %v293_v22, %s1216_s11  ;;  %561 = vrot.lane.b32.xlu0 %v949_v33, %s1215_s21 }
  0x67   : > { %416 = vrot.lane.b32.xlu1 %v966_v42, %s1212_s7  ;;  %269 = vrot.lane.b32.xlu0 %v951_v43, %s1210_s5 }
  0x6b   : > { %610 = vrot.lane.b32.xlu1 %v294_v35, %s1216_s11  ;;  %463 = vrot.lane.b32.xlu0 %v973_v44, %s1213_s8 }
  0x6f   : > { %271 = vrot.lane.b32.xlu0 %v952_v45, %s1210_s5  ;;  %318 = vrot.lane.b32.xlu1 %v296_v46, %s1209_s4  ;;  %s202_s5 = sand.u32 1, %s1191_s13  }
  0x70   : > { %s826_s23 = scalar_lea.sflag [#allocation4], %s202_s5 }
  0x73   : > { %465 = vrot.lane.b32.xlu0 %v974_v47, %s1213_s8  ;;  %513 = vrot.lane.b32.xlu1 %v1333_v12, %s1214_s9 }
  0x77   : > { %320 = vrot.lane.b32.xlu0 %v297_v48, %s1209_s4  ;;  %368 = vrot.lane.b32.xlu1 %v959_v49, %s1211_s6 }
  0x7b   : > { %515 = vrot.lane.b32.xlu0 %v1338_v15, %s1214_s9  ;;  %563 = vrot.lane.b32.xlu1 %v950_v36, %s1215_s21 }
  0x7f   : > { %370 = vrot.lane.b32.xlu0 %v960_v50, %s1211_s6  ;;  %418 = vrot.lane.b32.xlu1 %v967_v51, %s1212_s7  ;;  %s942_s6 = sshll.u32 %s202_s5, 2 }
  0x83   : > { %565 = vrot.lane.b32.xlu0 %v951_v43, %s1215_s21  ;;  %612 = vrot.lane.b32.xlu1 %v295_v39, %s1216_s11 }
  0x87   : > { %420 = vrot.lane.b32.xlu0 %v968_v52, %s1212_s7  ;;  %467 = vrot.lane.b32.xlu1 %v975_v53, %s1213_s8  ;;  %s1012_s7 = sshll.u32 %s1199_s15, 6  ;;  %s1217_s15 = smov [#allocation3]  }
  0x88   : > { %s1133_s27 = sshll.u32 %s1217_s15, 4  ;;  %s1134_s27 = int_to_ptr.vmem [resolvable:$false] %s1133_s27 }
  0x89   : > { %s1135_s28 = scalar_lea.vmem %s1134_s27, 128 }
  0x8b   : > { %614 = vrot.lane.b32.xlu0 %v296_v46, %s1216_s11  ;;  %469 = vrot.lane.b32.xlu1 %v976_v54, %s1213_s8  ;;  %s204_s8 = scalar_lea.vmem [#allocation3], %s942_s6 }
  0x8d   : > { %v307_v56 = vpop.permute.xlu1 %306  ;;  %v258_v57 = vpop.permute.xlu0 %257 }
  0x8e   : > { %282 = vst.msk [vmem:[#allocation2] sm:$0xff] %vm281_vm2, %v258_v57 }
  0x8f   : > { %517 = vrot.lane.b32.xlu0 %v1349_v17, %s1214_s9  ;;  %519 = vrot.lane.b32.xlu1 %v984_v55, %s1214_s9  ;;  %331 = vst.msk [vmem:[#allocation2] sm:$0xff] %vm330_vm3, %v307_v56  ;;  %s840_s9 = sshll.u32 %s204_s8, 4  ;;  %s1543_s9 = int_to_ptr.vmem [resolvable:$true] %s840_s9 }
  0x90   : > { %s1129_s26 = scalar_lea.vmem %s1543_s9, 64  ;;  %p1136_p1 = scmp.lt.s32.totalorder %s1543_s9, %s1134_s27 }
  0x91   : > { %v309_v59 = vpop.permute.xlu1 %308  ;;  %v260_v60 = vpop.permute.xlu0 %259  ;;  %p1130_p12 = scmp.ne.s32.totalorder %s1543_s9, %s1129_s26  ;;  %p1137_p2 = scmp.lt.s32.totalorder %s1135_s28, %s1129_s26 }
  0x92   : > { %283 = vst.msk [vmem:[#allocation2 + $0x8] sm:$0xff] %vm281_vm2, %v260_v60 }
  0x93   : > { %567 = vrot.lane.b32.xlu0 %v952_v45, %s1215_s21  ;;  %569 = vrot.lane.b32.xlu1 %v992_v58, %s1215_s21  ;;  %332 = vst.msk [vmem:[#allocation2 + $0x8] sm:$0xff] %vm330_vm3, %v309_v59  ;;  %s1541_s21 = scalar_lea.hbm %s1591_s3, %s1012_s7  ;;  %p1131_p13 = pnand %p1130_p12, %p1278_p4 }
  0x94   : > { %p1138_p3 = por %p1137_p2, %p1136_p1 }
  0x95   : > { %v359_v62 = vpop.permute.xlu1 %358  ;;  %v357_v63 = vpop.permute.xlu0 %356  ;;  %p1132_p0 = pneg %p1131_p13 }
  0x96   : > { %382 = vst.msk [vmem:[#allocation2 + $0x8] sm:$0xff] %vm380_vm4, %v359_v62  ;;  %381 = vst.msk [vmem:[#allocation2] sm:$0xff] %vm380_vm4, %v357_v63 }
  0x97   : > { %616 = vrot.lane.b32.xlu0 %v297_v48, %s1216_s11  ;;  %618 = vrot.lane.b32.xlu1 %v1000_v61, %s1216_s11  ;;  %p1139_p5 = pnand %p1138_p3, %p1132_p0 }
  0x99   : > { %v262_v0 = vpop.permute.xlu1 %261  ;;  %v407_v1 = vpop.permute.xlu0 %406 }
  0x9a   : > { %284 = vst.msk [vmem:[#allocation2 + $0x10] sm:$0xff] %vm281_vm2, %v262_v0 }
  0x9b   : > { %431 = vst.msk [vmem:[#allocation2] sm:$0xff] %vm430_vm5, %v407_v1 }
  0x9d   : > { %v456_v2 = vpop.permute.xlu1 %455  ;;  %v409_v3 = vpop.permute.xlu0 %408 }
  0x9e   : > { %480 = vst.msk [vmem:[#allocation2] sm:$0xff] %vm479_vm6, %v456_v2  ;;  %v1001_v2 = vld [vmem:[%s1590_s2] ss:$0 sm:$0xff] }
  0x9f   : > { %432 = vst.msk [vmem:[#allocation2 + $0x8] sm:$0xff] %vm430_vm5, %v409_v3 }
  0xa1   : > { %v311_v4 = vpop.permute.xlu1 %310  ;;  %v264_v5 = vpop.permute.xlu0 %263 }
  0xa2   : > { %333 = vst.msk [vmem:[#allocation2 + $0x10] sm:$0xff] %vm330_vm3, %v311_v4 }
  0xa3   : > { %285 = vst.msk [vmem:[#allocation2 + $0x18] sm:$0xff] %vm281_vm2, %v264_v5 }
  0xa5   : > { %v506_v6 = vpop.permute.xlu1 %505  ;;  %v458_v7 = vpop.permute.xlu0 %457 }
  0xa6   : > { %530 = vst.msk [vmem:[#allocation2] sm:$0xff] %vm529_vm7, %v506_v6 }
  0xa7   : > { %481 = vst.msk [vmem:[#allocation2 + $0x8] sm:$0xff] %vm479_vm6, %v458_v7 }
  0xa9   : > { %v361_v8 = vpop.permute.xlu1 %360  ;;  %v313_v9 = vpop.permute.xlu0 %312 }
  0xaa   : > { %383 = vst.msk [vmem:[#allocation2 + $0x10] sm:$0xff] %vm380_vm4, %v361_v8 }
  0xab   : > { %334 = vst.msk [vmem:[#allocation2 + $0x18] sm:$0xff] %vm330_vm3, %v313_v9 }
  0xad   : > { %v556_v10 = vpop.permute.xlu1 %555  ;;  %v508_v11 = vpop.permute.xlu0 %507 }
  0xae   : > { %580 = vst.msk [vmem:[#allocation2] sm:$0xff] %vm579_vm8, %v556_v10 }
  0xaf   : > { %531 = vst.msk [vmem:[#allocation2 + $0x8] sm:$0xff] %vm529_vm7, %v508_v11 }
  0xb1   : > { %v411_v12 = vpop.permute.xlu1 %410  ;;  %v363_v13 = vpop.permute.xlu0 %362 }
  0xb2   : > { %433 = vst.msk [vmem:[#allocation2 + $0x10] sm:$0xff] %vm430_vm5, %v411_v12 }
  0xb3   : > { %384 = vst.msk [vmem:[#allocation2 + $0x18] sm:$0xff] %vm380_vm4, %v363_v13 }
  0xb5   : > { %v605_v14 = vpop.permute.xlu1 %604  ;;  %v558_v15 = vpop.permute.xlu0 %557 }
  0xb6   : > { %629 = vst.msk [vmem:[#allocation2] sm:$0xff] %vm628_vm9, %v605_v14 }
  0xb7   : > { %581 = vst.msk [vmem:[#allocation2 + $0x8] sm:$0xff] %vm579_vm8, %v558_v15 }
  0xb9   : > { %v413_v16 = vpop.permute.xlu1 %412  ;;  %v266_v17 = vpop.permute.xlu0 %265 }
  0xba   : > { %434 = vst.msk [vmem:[#allocation2 + $0x18] sm:$0xff] %vm430_vm5, %v413_v16 }
  0xbb   : > { %286 = vst.msk [vmem:[#allocation2 + $0x20] sm:$0xff] %vm281_vm2, %v266_v17 }
  0xbd   : > { %v607_v18 = vpop.permute.xlu1 %606  ;;  %v460_v19 = vpop.permute.xlu0 %459  ;;  %v637_v20 = vld [vmem:[#allocation2] sm:$0xff] }
  0xbe   : > { %630 = vst.msk [vmem:[#allocation2 + $0x8] sm:$0xff] %vm628_vm9, %v607_v18  ;;  %1038 = vmatprep.mubr.msk.f32.mxu0 %vm657_vm10, %v637_v20 }
  0xbf   : > { %482 = vst.msk [vmem:[#allocation2 + $0x10] sm:$0xff] %vm479_vm6, %v460_v19 }
  0xc1   : > { %v315_v21 = vpop.permute.xlu1 %314  ;;  %v268_v22 = vpop.permute.xlu0 %267 }
  0xc2   : > { %335 = vst.msk [vmem:[#allocation2 + $0x20] sm:$0xff] %vm330_vm3, %v315_v21 }
  0xc3   : > { %287 = vst.msk [vmem:[#allocation2 + $0x28] sm:$0xff] %vm281_vm2, %v268_v22 }
  0xc5   : > { %v510_v23 = vpop.permute.xlu1 %509  ;;  %v462_v24 = vpop.permute.xlu0 %461  ;;  %v638_v25 = vld [vmem:[#allocation2 + $0x8] sm:$0xff] }
  0xc6   : > { %532 = vst.msk [vmem:[#allocation2 + $0x10] sm:$0xff] %vm529_vm7, %v510_v23  ;;  %1039 = vmatmul.mubr.msk.f32.vlgmr.msra.gmra.mrb[0].mxu0 %vm657_vm10, %v638_v25 }
  0xc7   : > { %483 = vst.msk [vmem:[#allocation2 + $0x18] sm:$0xff] %vm479_vm6, %v462_v24 }
  0xc9   : > { %v365_v26 = vpop.permute.xlu1 %364  ;;  %v317_v27 = vpop.permute.xlu0 %316 }
  0xca   : > { %385 = vst.msk [vmem:[#allocation2 + $0x20] sm:$0xff] %vm380_vm4, %v365_v26 }
  0xcb   : > { %336 = vst.msk [vmem:[#allocation2 + $0x28] sm:$0xff] %vm330_vm3, %v317_v27 }
  0xcd   : > { %v560_v28 = vpop.permute.xlu1 %559  ;;  %v512_v29 = vpop.permute.xlu0 %511 }
  0xce   : > { %582 = vst.msk [vmem:[#allocation2 + $0x10] sm:$0xff] %vm579_vm8, %v560_v28 }
  0xcf   : > { %533 = vst.msk [vmem:[#allocation2 + $0x18] sm:$0xff] %vm529_vm7, %v512_v29 }
  0xd1   : > { %v415_v30 = vpop.permute.xlu1 %414  ;;  %v367_v31 = vpop.permute.xlu0 %366 }
  0xd2   : > { %435 = vst.msk [vmem:[#allocation2 + $0x20] sm:$0xff] %vm430_vm5, %v415_v30 }
  0xd3   : > { %386 = vst.msk [vmem:[#allocation2 + $0x28] sm:$0xff] %vm380_vm4, %v367_v31 }
  0xd5   : > { %v609_v32 = vpop.permute.xlu1 %608  ;;  %v562_v33 = vpop.permute.xlu0 %561 }
  0xd6   : > { %631 = vst.msk [vmem:[#allocation2 + $0x10] sm:$0xff] %vm628_vm9, %v609_v32 }
  0xd7   : > { %583 = vst.msk [vmem:[#allocation2 + $0x18] sm:$0xff] %vm579_vm8, %v562_v33 }
  0xd9   : > { %v417_v34 = vpop.permute.xlu1 %416  ;;  %v270_v35 = vpop.permute.xlu0 %269 }
  0xda   : > { %436 = vst.msk [vmem:[#allocation2 + $0x28] sm:$0xff] %vm430_vm5, %v417_v34 }
  0xdb   : > { %288 = vst.msk [vmem:[#allocation2 + $0x30] sm:$0xff] %vm281_vm2, %v270_v35 }
  0xdd   : > { %v611_v36 = vpop.permute.xlu1 %610  ;;  %v464_v37 = vpop.permute.xlu0 %463  ;;  %v639_v38 = vld [vmem:[#allocation2 + $0x10] sm:$0xff] }
  0xde   : > { %632 = vst.msk [vmem:[#allocation2 + $0x18] sm:$0xff] %vm628_vm9, %v611_v36  ;;  %1041 = vmatprep.mubr.msk.f32.mxu0 %vm657_vm10, %v639_v38 }
  0xdf   : > { %484 = vst.msk [vmem:[#allocation2 + $0x20] sm:$0xff] %vm479_vm6, %v464_v37 }
  0xe1   : > { %v272_v39 = vpop.permute.xlu0 %271  ;;  %v319_v40 = vpop.permute.xlu1 %318 }
  0xe2   : > { %289 = vst.msk [vmem:[#allocation2 + $0x38] sm:$0xff] %vm281_vm2, %v272_v39 }
  0xe3   : > { %337 = vst.msk [vmem:[#allocation2 + $0x30] sm:$0xff] %vm330_vm3, %v319_v40 }
  0xe5   : > { %v466_v41 = vpop.permute.xlu0 %465  ;;  %v514_v42 = vpop.permute.xlu1 %513  ;;  %v640_v43 = vld [vmem:[#allocation2 + $0x18] sm:$0xff] }
  0xe6   : > { %485 = vst.msk [vmem:[#allocation2 + $0x28] sm:$0xff] %vm479_vm6, %v466_v41  ;;  %1042 = vmatmul.mubr.msk.f32.gmra.mrb[2].mxu0 %vm657_vm10, %v640_v43 }
  0xe7   : > { %534 = vst.msk [vmem:[#allocation2 + $0x20] sm:$0xff] %vm529_vm7, %v514_v42 }
  0xe9   : > { %v321_v44 = vpop.permute.xlu0 %320  ;;  %v369_v45 = vpop.permute.xlu1 %368 }
  0xea   : > { %338 = vst.msk [vmem:[#allocation2 + $0x38] sm:$0xff] %vm330_vm3, %v321_v44 }
  0xeb   : > { %387 = vst.msk [vmem:[#allocation2 + $0x30] sm:$0xff] %vm380_vm4, %v369_v45 }
  0xed   : > { %v516_v46 = vpop.permute.xlu0 %515  ;;  %v564_v47 = vpop.permute.xlu1 %563 }
  0xee   : > { %535 = vst.msk [vmem:[#allocation2 + $0x28] sm:$0xff] %vm529_vm7, %v516_v46 }
  0xef   : > { %584 = vst.msk [vmem:[#allocation2 + $0x20] sm:$0xff] %vm579_vm8, %v564_v47 }
  0xf1   : > { %v371_v48 = vpop.permute.xlu0 %370  ;;  %v419_v49 = vpop.permute.xlu1 %418 }
  0xf2   : > { %388 = vst.msk [vmem:[#allocation2 + $0x38] sm:$0xff] %vm380_vm4, %v371_v48 }
  0xf3   : > { %437 = vst.msk [vmem:[#allocation2 + $0x30] sm:$0xff] %vm430_vm5, %v419_v49 }
  0xf5   : > { %v566_v50 = vpop.permute.xlu0 %565  ;;  %v613_v51 = vpop.permute.xlu1 %612 }
  0xf6   : > { %585 = vst.msk [vmem:[#allocation2 + $0x28] sm:$0xff] %vm579_vm8, %v566_v50 }
  0xf7   : > { %633 = vst.msk [vmem:[#allocation2 + $0x20] sm:$0xff] %vm628_vm9, %v613_v51 }
  0xf9   : > { %v421_v52 = vpop.permute.xlu0 %420  ;;  %v468_v53 = vpop.permute.xlu1 %467 }
  0xfa   : > { %438 = vst.msk [vmem:[#allocation2 + $0x38] sm:$0xff] %vm430_vm5, %v421_v52 }
  0xfb   : > { %486 = vst.msk [vmem:[#allocation2 + $0x30] sm:$0xff] %vm479_vm6, %v468_v53 }
  0xfd   : > { %v615_v54 = vpop.permute.xlu0 %614  ;;  %v470_v55 = vpop.permute.xlu1 %469 }
  0xfe   : > { %v641_v56 = vld [vmem:[#allocation2 + $0x20] sm:$0xff]  ;;  %634 = vst.msk [vmem:[#allocation2 + $0x28] sm:$0xff] %vm628_vm9, %v615_v54 }
  0xff   : > { %487 = vst.msk [vmem:[#allocation2 + $0x38] sm:$0xff] %vm479_vm6, %v470_v55  ;;  %1044 = vmatprep.mubr.msk.f32.mxu1 %vm657_vm10, %v641_v56 }
 0x101   : > { %v518_v57 = vpop.permute.xlu0 %517  ;;  %v520_v58 = vpop.permute.xlu1 %519 }
 0x102   : > { %536 = vst.msk [vmem:[#allocation2 + $0x30] sm:$0xff] %vm529_vm7, %v518_v57  ;;  %537 = vst.msk [vmem:[#allocation2 + $0x38] sm:$0xff] %vm529_vm7, %v520_v58 }
 0x105   : > { %v568_v59 = vpop.permute.xlu0 %567  ;;  %v570_v60 = vpop.permute.xlu1 %569  ;;  %v642_v61 = vld [vmem:[#allocation2 + $0x28] sm:$0xff] }
 0x106   : > { %586 = vst.msk [vmem:[#allocation2 + $0x30] sm:$0xff] %vm579_vm8, %v568_v59  ;;  %587 = vst.msk [vmem:[#allocation2 + $0x38] sm:$0xff] %vm579_vm8, %v570_v60  ;;  %1045 = vmatmul.mubr.msk.f32.vlgmr.msra.gmra.mrb[0].mxu1 %vm657_vm10, %v642_v61 }
 0x109   : > { %v617_v62 = vpop.permute.xlu0 %616  ;;  %v619_v63 = vpop.permute.xlu1 %618 }
 0x10a   : > { %635 = vst.msk [vmem:[#allocation2 + $0x30] sm:$0xff] %vm628_vm9, %v617_v62  ;;  %636 = vst.msk [vmem:[#allocation2 + $0x38] sm:$0xff] %vm628_vm9, %v619_v63 }
 0x111   : > { %v643_v0 = vld [vmem:[#allocation2 + $0x30] sm:$0xff]  ;;  %v644_v1 = vld [vmem:[#allocation2 + $0x38] sm:$0xff] }
 0x112   : > { %1047 = vmatprep.mubr.msk.f32.mxu1 %vm657_vm10, %v643_v0 }
 0x113   : > { %1048 = vmatmul.mubr.msk.f32.gmra.mrb[2].mxu1 %vm657_vm10, %v644_v1 }
 0x199   : > { %v1040_v3 = vpop.f32.mrb[0].mxu0 }
 0x19a   : > { %v752_v4 = vpop.f32.mrb[1].mxu0  ;;  %v758_v6 = vadd.f32 %v1040_v3, %v1001_v2 }
 0x19b   : > { %v753_v5 = vadd.f32 %v1001_v2, %v752_v4 }
 0x19d   : > { %791 = vxpose.xlu0.b32.start [1/8] (short) (narrow) %v753_v5, 8 }
 0x1a1   : > { %792 = vxpose.xlu0.b32.cont [2/8] (short) (narrow) %v758_v6, 8 }
 0x1b9   : > { %v1043_v7 = vpop.f32.mrb[2].mxu0 }
 0x1ba   : > { %v762_v8 = vpop.f32.mrb[3].mxu0  ;;  %v768_v10 = vadd.f32 %v1043_v7, %v1001_v2 }
 0x1bb   : > { %v763_v9 = vadd.f32 %v1001_v2, %v762_v8 }
 0x1bd   : > { %793 = vxpose.xlu0.b32.cont [3/8] (short) (narrow) %v763_v9, 8 }
 0x1c1   : > { %794 = vxpose.xlu0.b32.cont [4/8] (short) (narrow) %v768_v10, 8 }
 0x1d9   : > { %v1046_v11 = vpop.f32.mrb[0].mxu1 }
 0x1da   : > { %v772_v12 = vpop.f32.mrb[1].mxu1  ;;  %v778_v14 = vadd.f32 %v1046_v11, %v1001_v2 }
 0x1db   : > { %v773_v13 = vadd.f32 %v1001_v2, %v772_v12 }
 0x1dd   : > { %795 = vxpose.xlu0.b32.cont [5/8] (short) (narrow) %v773_v13, 8 }
 0x1e1   : > { %796 = vxpose.xlu0.b32.cont [6/8] (short) (narrow) %v778_v14, 8 }
 0x1e6   : > { %v1049_v15 = vpop.f32.mrb[2].mxu1 }
 0x1e7   : > { %v782_v16 = vpop.f32.mrb[3].mxu1  ;;  %v788_v18 = vadd.f32 %v1049_v15, %v1001_v2 }
 0x1e8   : > { %v783_v17 = vadd.f32 %v1001_v2, %v782_v16 }
 0x1ea   : > { %797 = vxpose.xlu0.b32.cont [7/8] (short) (narrow) %v783_v17, 8 }
 0x1ee   : > { %798 = vxpose.xlu0.b32.end [8/8] (short) (narrow) %v788_v18, 8 }
 0x252   : > { %v807_v19 = vpop.trf.xlu0 }
 0x253   : > { %824 = vst.msk [vmem:[%s204_s8] sm:$0xf] %vm823_vm11, %v807_v19 }
 0x254   : > { %1142 = shalt.err (!%p1139_p5)
}
 0x255   : > { %s1143_s29 = scalar_lea.hbm %s1541_s21, 64  ;;  %s1147_s30 = scalar_lea.hbm %s1591_s3, 128 }
 0x256   : > { %p1144_p6 = scmp.ne.s32.totalorder %s1541_s21, %s1143_s29  ;;  %p1148_p10 = scmp.lt.u32.totalorder %s1541_s21, %s1591_s3 }
 0x257   : > { %p1149_p11 = scmp.lt.u32.totalorder %s1147_s30, %s1143_s29  ;;  %p1151_p13 = scmp.lt.u32.totalorder %s1143_s29, %s1541_s21 }
 0x258   : > { %p1145_p7 = pnand %p1144_p6, %p1278_p4 }
 0x259   : > { %p1150_p12 = por %p1149_p11, %p1148_p10 }
 0x25a   : > { %p1146_p9 = pneg %p1145_p7 }
 0x25b   : > { %p1152_p0 = por %p1151_p13, %p1150_p12 }
 0x25d   : > { %p1153_p1 = pnand %p1152_p0, %p1146_p9 }
 0x25f   : > { %1156 = shalt.err (!%p1153_p1)
}
 0x260   : > { %1065 = dma.vmem_to_hbm [thread:$0]  (%p1278_p4), %s1543_s9, 64, %s1541_s21, %s826_s23  }
 0x261 PF: > { %p1071_p2 = scmp.ge.s32.totalorder %s1207_s17, 2  ;;  %s852_s6 = sand.u32 1, %s1187_s12  }
 0x262   : > { %s853_s7 = scalar_lea.sflag [#allocation4], %s852_s6 }
 0x263   : > { %p1068_p3 = pnand %p1071_p2, %p1285_p8 }
 0x265   : > { %1182 = dma.done.wait (!%p1068_p3), %s853_s7, 64  }
 0x266   : > { %1184 = vsyncadd (!%p1068_p3), %s853_s7, 4294967232  ;;  %s16_s17 = sadd.s32 1, %s1207_s17   ;;  %s1594_s12 = smov %s1191_s13 }
 0x267   : > { %p13_p5 = scmp.ge.s32.totalorder %s16_s17, 4   ;;  %s1595_s13 = smov %s1195_s14 }
 0x268   : > { %s1596_s14 = smov %s1291_s25  ;;  %s1597_s15 = smov %s1203_s16 }
 0x269   : > { %s1598_s16 = smov %s1600_s20  ;;  %15 = sbr.rel (!%p13_p5) target bundleno = 4 (0x4), region = 82 }
 0x270   :  { %858 = vsyncpa [#allocation4], 1 }
 0x271   :  { %860 = vsyncpa [#allocation4 + $0x1], 1 }

</bundles_post_ra>
